<compile_context>
chip_gen: v7x
topology: tpu7x:2x2x1
jax: 0.10.0
libtpu: 0.0.40
codegen_flags: <defaults>
</compile_context>

<pallas_src>
import jax
import jax.numpy as jnp
from jax import lax
from jax.experimental import pallas as pl
from jax.experimental.pallas import tpu as pltpu


# ----------------------------------------------------------------------------
# Pallas kernel: one (direction, time-chunk) grid step of a fused BiLSTM.
#   g_ref    : (CL, N, 4H)  precomputed gates x@W_ih + b for this chunk
#   w_hh_ref : (H, 4H)      hidden->gates weights for this direction
#   out_ref  : (CL, N, H)   per-timestep hidden states for this chunk
#   h_sc,c_sc: (N, H)       VMEM scratch carrying the recurrent state across
#                           time chunks (reset at chunk 0 of each direction)
# Grid axis 0 = direction (0 fwd, 1 bwd), axis 1 = time chunk.
# For the backward direction the index_map walks chunks in reverse and the
# kernel walks timesteps inside the chunk in reverse, so the output is written
# directly in natural time order (no flips anywhere).
# ----------------------------------------------------------------------------
def bilstm_kernel(g_ref, w_hh_ref, out_ref, h_sc, c_sc):
    d = pl.program_id(0)          # direction
    c = pl.program_id(1)          # chunk index (in processing order)
    cl = g_ref.shape[0]
    H = w_hh_ref.shape[0]

    @pl.when(c == 0)
    def _():
        h_sc[...] = jnp.zeros_like(h_sc)
        c_sc[...] = jnp.zeros_like(c_sc)

    def step(i, carry):
        # forward: t = i ; backward: t = cl - 1 - i
        t = i + d * (cl - 1 - 2 * i)
        gates = g_ref[t] + jnp.dot(
            h_sc[...], w_hh_ref[...], preferred_element_type=jnp.float32
        )  # (N, 4H)
        i_g = jax.nn.sigmoid(gates[:, 0 * H:1 * H])
        f_g = jax.nn.sigmoid(gates[:, 1 * H:2 * H])
        g_g = jnp.tanh(gates[:, 2 * H:3 * H])
        o_g = jax.nn.sigmoid(gates[:, 3 * H:4 * H])
        c_new = f_g * c_sc[...] + i_g * g_g
        h_new = o_g * jnp.tanh(c_new)
        c_sc[...] = c_new
        h_sc[...] = h_new
        out_ref[t] = h_new
        return carry

    lax.fori_loop(0, cl, step, 0)


def bilstm_tm(x_tm, params, chunk_len=128):
    """Fused bidirectional LSTM, time-major. x_tm: (L, N, D) -> (L, N, 2H)."""
    L, N, _ = x_tm.shape
    w_ih, w_hh, b = params["w_ih"], params["w_hh"], params["b"]  # (2,D,4H),(2,H,4H),(2,4H)
    H = w_hh.shape[1]

    # --- Hoisted input projection: one large matmul for both directions. ---
    # TODO(synk): could be computed per-chunk inside the kernel to avoid the
    # HBM round trip of the gate slab; kept as a plain XLA matmul for clarity.
    g = jnp.einsum("lnd,kdh->klnh", x_tm, w_ih) + b[:, None, None, :]  # (2,L,N,4H)

    # Pad time to a multiple of the chunk length.  Zero pre-activation padding
    # keeps the state exactly (0, 0) through pad steps (i*g = 0.5*tanh(0) = 0),
    # so the backward direction (which sees the pad steps first) starts the
    # real sequence with zero state, matching PyTorch.
    cl = max(1, min(chunk_len, L))
    n_chunks = -(-L // cl)
    l_pad = n_chunks * cl
    if l_pad > L:
        g = jnp.pad(g, ((0, 0), (0, l_pad - L), (0, 0), (0, 0)))

    # Chunk index: forward walks 0..n_chunks-1, backward walks n_chunks-1..0.
    tmap = lambda d, c: (d, c + d * (n_chunks - 1 - 2 * c), 0, 0)

    out = pl.pallas_call(
        bilstm_kernel,
        out_shape=jax.ShapeDtypeStruct((2, l_pad, N, H), jnp.float32),
        grid_spec=pltpu.PrefetchScalarGridSpec(
            num_scalar_prefetch=0,
            grid=(2, n_chunks),
            in_specs=[
                pl.BlockSpec((None, cl, N, 4 * H), tmap),
                pl.BlockSpec((None, H, 4 * H), lambda d, c: (d, 0, 0)),
            ],
            out_specs=pl.BlockSpec((None, cl, N, H), tmap),
            scratch_shapes=[
                pltpu.VMEM((N, H), jnp.float32),  # h
                pltpu.VMEM((N, H), jnp.float32),  # c
            ],
        ),
        compiler_params=pltpu.CompilerParams(
            dimension_semantics=("parallel", "arbitrary")),
    )(g, w_hh)

    out = out[:, :L]                 # (2, L, N, H)
    out = jnp.moveaxis(out, 0, 2)    # (L, N, 2, H): [fwd | bwd] along features
    return out.reshape(L, N, 2 * H)


def listen_forward(x, params, chunk_len=128):
    """Forward pass of Listen. x: (N, L, D) batch-first -> (N, L', 2H)."""
    xt = jnp.transpose(x, (1, 0, 2))          # time-major once at the boundary
    xt = bilstm_tm(xt, params["blstm"], chunk_len)
    for layer_params in params["layers"]:
        L, N, F = xt.shape
        if L % 2 == 1:
            xt = jnp.concatenate([xt, xt[-1:]], axis=0)
            L += 1
        # pyramid reshape, time-major: new[j, n] = [x[2j, n], x[2j+1, n]]
        xt = (xt.reshape(L // 2, 2, N, F)
                .transpose(0, 2, 1, 3)
                .reshape(L // 2, N, 2 * F))
        xt = bilstm_tm(xt, layer_params, chunk_len)
    return jnp.transpose(xt, (1, 0, 2))       # back to batch-first


# ----------------------------------------------------------------------------
# Deterministic parameter init (shapes follow nn.LSTM(bidirectional=True),
# gate order i, f, g, o; bias = b_ih + b_hh; index 0 = forward, 1 = backward).
# ----------------------------------------------------------------------------
def init_bilstm_params(key, input_size, hidden_size):
    k = 1.0 / jnp.sqrt(jnp.float32(hidden_size))
    keys = jax.random.split(key, 8)

    def u(kk, shape):
        return jax.random.uniform(kk, shape, jnp.float32, -k, k)

    w_ih = jnp.stack([u(keys[0], (input_size, 4 * hidden_size)),
                      u(keys[4], (input_size, 4 * hidden_size))])
    w_hh = jnp.stack([u(keys[1], (hidden_size, 4 * hidden_size)),
                      u(keys[5], (hidden_size, 4 * hidden_size))])
    b = jnp.stack([u(keys[2], (4 * hidden_size,)) + u(keys[3], (4 * hidden_size,)),
                   u(keys[6], (4 * hidden_size,)) + u(keys[7], (4 * hidden_size,))])
    return {"w_ih": w_ih, "w_hh": w_hh, "b": b}


def init_listen_params(key, n_layers, input_size, hidden_size):
    keys = jax.random.split(key, n_layers + 1)
    return {
        "blstm": init_bilstm_params(keys[0], input_size, hidden_size),
        "layers": [init_bilstm_params(keys[i + 1], hidden_size * 4, hidden_size)
                   for i in range(n_layers)],
    }


# ----------------------------------------------------------------------------
# Pure-JAX reference (lax.scan, batch-first like the PyTorch module) to
# validate the Pallas kernel.
# ----------------------------------------------------------------------------
def _lstm_dir_ref(xt, w_ih, w_hh, b):
    H = w_hh.shape[0]
    N = xt.shape[1]

    def step(carry, x_t):
        h, c = carry
        gates = x_t @ w_ih + h @ w_hh + b
        i = jax.nn.sigmoid(gates[:, :H])
        f = jax.nn.sigmoid(gates[:, H:2 * H])
        g = jnp.tanh(gates[:, 2 * H:3 * H])
        o = jax.nn.sigmoid(gates[:, 3 * H:])
        c = f * c + i * g
        h = o * jnp.tanh(c)
        return (h, c), h

    init = (jnp.zeros((N, H), jnp.float32), jnp.zeros((N, H), jnp.float32))
    _, hs = lax.scan(step, init, xt)
    return hs


def _bilstm_ref(x, p):
    xt = jnp.transpose(x, (1, 0, 2))
    h_f = _lstm_dir_ref(xt, p["w_ih"][0], p["w_hh"][0], p["b"][0])
    h_b = _lstm_dir_ref(xt[::-1], p["w_ih"][1], p["w_hh"][1], p["b"][1])[::-1]
    return jnp.transpose(jnp.concatenate([h_f, h_b], axis=-1), (1, 0, 2))


def _listen_ref(x, params):
    x = _bilstm_ref(x, params["blstm"])
    for lp in params["layers"]:
        n, l, f = x.shape
        if l % 2 == 1:
            x = jnp.concatenate([x, x[:, -1:, :]], axis=1)
            l += 1
        x = x.reshape(n, l // 2, f * 2)
        x = _bilstm_ref(x, lp)
    return x


if __name__ == "__main__":
    # Listen(n_layers=2, input_size=16, hidden_size=32) on x: (batch=2, seq=8, feat=16).
    n_layers, input_size, hidden_size = 2, 16, 32
    N, L = 2, 8

    key = jax.random.PRNGKey(0)
    k_x, k_p = jax.random.split(key)
    x = jax.random.normal(k_x, (N, L, input_size), dtype=jnp.float32)
    params = init_listen_params(k_p, n_layers, input_size, hidden_size)

    listen = jax.jit(listen_forward)
    out = jax.block_until_ready(listen(x, params))

    # Expected output: seq halved per pyramid layer, feature dim = 2*hidden.
    assert out.shape == (N, L // (2 ** n_layers), 2 * hidden_size), out.shape

    ref = jax.block_until_ready(_listen_ref(x, params))
    err = float(jnp.max(jnp.abs(out - ref)))
    assert jnp.allclose(out, ref, rtol=5e-4, atol=5e-4), f"mismatch, max abs err={err}"

    print("KERNEL_OK")
</pallas_src>

<mosaic_0001>
module attributes {stable_mosaic.version = 11 : i64} {
  func.func @bilstm_kernel(%arg0: i32, %arg1: i32, %arg2: memref<1x8x2x128xf32, #tpu.memory_space<vmem>>, %arg3: memref<1x32x128xf32, #tpu.memory_space<vmem>>, %arg4: memref<1x8x2x32xf32, #tpu.memory_space<vmem>>, %arg5: memref<2x32xf32, #tpu.memory_space<vmem>>, %arg6: memref<2x32xf32, #tpu.memory_space<vmem>>) attributes {dimension_semantics = [#tpu.dimension_semantics<parallel>, #tpu.dimension_semantics<arbitrary>], iteration_bounds = array<i64: 2, 1>, scalar_prefetch = 0 : i64, scratch_operands = 2 : i64, tpu.core_type = #tpu.core_type<tc>, window_params = [{transform_indices = @transform_0, window_bounds = array<i64: 1, 8, 2, 128>}, {transform_indices = @transform_1, window_bounds = array<i64: 1, 32, 128>}, {transform_indices = @transform_2, window_bounds = array<i64: 1, 8, 2, 32>}]} {
    %c0_i32 = arith.constant 0 : i32
    %0 = arith.cmpi eq, %arg1, %c0_i32 : i32
    %1 = arith.extui %0 : i1 to i32
    %c0_i32_0 = arith.constant 0 : i32
    %2 = arith.cmpi ne, %1, %c0_i32_0 : i32
    scf.if %2 {
      %cst = arith.constant 0.000000e+00 : f32
      %4 = vector.broadcast %cst : f32 to vector<2x32xf32>
      %c0 = arith.constant 0 : index
      %c0_3 = arith.constant 0 : index
      %5 = vector.load %arg5[%c0, %c0_3] : memref<2x32xf32, #tpu.memory_space<vmem>>, vector<2x32xf32>
      tpu.vector_store %arg5[%c0, %c0_3], %4 {strides = array<i32>} : memref<2x32xf32, #tpu.memory_space<vmem>>, vector<2x32xf32>,
      %cst_4 = arith.constant 0.000000e+00 : f32
      %6 = vector.broadcast %cst_4 : f32 to vector<2x32xf32>
      %c0_5 = arith.constant 0 : index
      %c0_6 = arith.constant 0 : index
      %7 = vector.load %arg6[%c0_5, %c0_6] : memref<2x32xf32, #tpu.memory_space<vmem>>, vector<2x32xf32>
      tpu.vector_store %arg6[%c0_5, %c0_6], %6 {strides = array<i32>} : memref<2x32xf32, #tpu.memory_space<vmem>>, vector<2x32xf32>,
    } else {
    }
    %c0_i32_1 = arith.constant 0 : i32
    %c8_i32 = arith.constant 8 : i32
    %3 = arith.addi %c0_i32_1, %c8_i32 : i32
    %c1_i32 = arith.constant 1 : i32
    scf.for %arg7 = %c0_i32_1 to %3 step %c1_i32  : i32 {
      %c2_i32 = arith.constant 2 : i32
      %4 = arith.muli %c2_i32, %arg7 : i32
      %c7_i32 = arith.constant 7 : i32
      %5 = arith.subi %c7_i32, %4 : i32
      %6 = arith.muli %arg0, %5 : i32
      %7 = arith.addi %arg7, %6 : i32
      %c0 = arith.constant 0 : index
      %8 = arith.index_cast %7 : i32 to index
      %c0_3 = arith.constant 0 : index
      %c0_4 = arith.constant 0 : index
      %9 = vector.load %arg2[%c0, %8, %c0_3, %c0_4] : memref<1x8x2x128xf32, #tpu.memory_space<vmem>>, vector<1x1x2x128xf32>
      %10 = vector.shape_cast %9 : vector<1x1x2x128xf32> to vector<2x128xf32>
      %c0_5 = arith.constant 0 : index
      %c0_6 = arith.constant 0 : index
      %11 = vector.load %arg5[%c0_5, %c0_6] : memref<2x32xf32, #tpu.memory_space<vmem>>, vector<2x32xf32>
      %c0_7 = arith.constant 0 : index
      %c0_8 = arith.constant 0 : index
      %c0_9 = arith.constant 0 : index
      %12 = vector.load %arg3[%c0_7, %c0_8, %c0_9] : memref<1x32x128xf32, #tpu.memory_space<vmem>>, vector<1x32x128xf32>
      %13 = vector.shape_cast %12 : vector<1x32x128xf32> to vector<32x128xf32>
      %cst = arith.constant dense<0.000000e+00> : vector<2x128xf32>
      %14 = tpu.matmul %11, %13, %cst {dimension_numbers = #tpu.dot_dimension_numbers<[1], [0], [0], [1], [0, 0, 1, 1], [], []>} : vector<2x32xf32>, vector<32x128xf32>, vector<2x128xf32> -> vector<2x128xf32>
      %15 = arith.addf %10, %14 : vector<2x128xf32>
      %16 = vector.extract_strided_slice %15 {offsets = [0, 0], sizes = [2, 32], strides = [1, 1]} : vector<2x128xf32> to vector<2x32xf32>
      %17 = arith.negf %16 : vector<2x32xf32>
      %18 = math.exp %17 : vector<2x32xf32>
      %cst_10 = arith.constant 1.000000e+00 : f32
      %19 = vector.broadcast %cst_10 : f32 to vector<2x32xf32>
      %20 = arith.addf %19, %18 : vector<2x32xf32>
      %21 = arith.divf %19, %20 : vector<2x32xf32>
      %22 = vector.extract_strided_slice %15 {offsets = [0, 32], sizes = [2, 32], strides = [1, 1]} : vector<2x128xf32> to vector<2x32xf32>
      %23 = arith.negf %22 : vector<2x32xf32>
      %24 = math.exp %23 : vector<2x32xf32>
      %cst_11 = arith.constant 1.000000e+00 : f32
      %25 = vector.broadcast %cst_11 : f32 to vector<2x32xf32>
      %26 = arith.addf %25, %24 : vector<2x32xf32>
      %27 = arith.divf %25, %26 : vector<2x32xf32>
      %28 = vector.extract_strided_slice %15 {offsets = [0, 64], sizes = [2, 32], strides = [1, 1]} : vector<2x128xf32> to vector<2x32xf32>
      %29 = math.tanh %28 : vector<2x32xf32>
      %30 = vector.extract_strided_slice %15 {offsets = [0, 96], sizes = [2, 32], strides = [1, 1]} : vector<2x128xf32> to vector<2x32xf32>
      %31 = arith.negf %30 : vector<2x32xf32>
      %32 = math.exp %31 : vector<2x32xf32>
      %cst_12 = arith.constant 1.000000e+00 : f32
      %33 = vector.broadcast %cst_12 : f32 to vector<2x32xf32>
      %34 = arith.addf %33, %32 : vector<2x32xf32>
      %35 = arith.divf %33, %34 : vector<2x32xf32>
      %c0_13 = arith.constant 0 : index
      %c0_14 = arith.constant 0 : index
      %36 = vector.load %arg6[%c0_13, %c0_14] : memref<2x32xf32, #tpu.memory_space<vmem>>, vector<2x32xf32>
      %37 = arith.mulf %27, %36 : vector<2x32xf32>
      %38 = arith.mulf %21, %29 : vector<2x32xf32>
      %39 = arith.addf %37, %38 : vector<2x32xf32>
      %40 = math.tanh %39 : vector<2x32xf32>
      %41 = arith.mulf %35, %40 : vector<2x32xf32>
      %c0_15 = arith.constant 0 : index
      %c0_16 = arith.constant 0 : index
      %42 = vector.load %arg6[%c0_15, %c0_16] : memref<2x32xf32, #tpu.memory_space<vmem>>, vector<2x32xf32>
      tpu.vector_store %arg6[%c0_15, %c0_16], %39 {strides = array<i32>} : memref<2x32xf32, #tpu.memory_space<vmem>>, vector<2x32xf32>,
      %c0_17 = arith.constant 0 : index
      %c0_18 = arith.constant 0 : index
      %43 = vector.load %arg5[%c0_17, %c0_18] : memref<2x32xf32, #tpu.memory_space<vmem>>, vector<2x32xf32>
      tpu.vector_store %arg5[%c0_17, %c0_18], %41 {strides = array<i32>} : memref<2x32xf32, #tpu.memory_space<vmem>>, vector<2x32xf32>,
      %c0_19 = arith.constant 0 : index
      %44 = arith.index_cast %7 : i32 to index
      %c0_20 = arith.constant 0 : index
      %c0_21 = arith.constant 0 : index
      %45 = vector.load %arg4[%c0_19, %44, %c0_20, %c0_21] : memref<1x8x2x32xf32, #tpu.memory_space<vmem>>, vector<1x1x2x32xf32>
      %46 = vector.shape_cast %45 : vector<1x1x2x32xf32> to vector<2x32xf32>
      %47 = vector.shape_cast %41 : vector<2x32xf32> to vector<1x1x2x32xf32>
      tpu.vector_store %arg4[%c0_19, %44, %c0_20, %c0_21], %47 {strides = array<i32>} : memref<1x8x2x32xf32, #tpu.memory_space<vmem>>, vector<1x1x2x32xf32>,
    }
    %c8_i32_2 = arith.constant 8 : i32
    return
  }
  func.func @transform_0(%arg0: i32, %arg1: i32) -> (i32, i32, i32, i32) {
    %c2_i32 = arith.constant 2 : i32
    %0 = arith.muli %c2_i32, %arg1 : i32
    %c0_i32 = arith.constant 0 : i32
    %1 = arith.subi %c0_i32, %0 : i32
    %2 = arith.muli %arg0, %1 : i32
    %3 = arith.addi %arg1, %2 : i32
    %c0_i32_0 = arith.constant 0 : i32
    %c0_i32_1 = arith.constant 0 : i32
    %c0_i32_2 = arith.constant 0 : i32
    return %arg0, %3, %c0_i32_0, %c0_i32_1 : i32, i32, i32, i32
  }
  func.func @transform_1(%arg0: i32, %arg1: i32) -> (i32, i32, i32) {
    %c0_i32 = arith.constant 0 : i32
    %c0_i32_0 = arith.constant 0 : i32
    %c0_i32_1 = arith.constant 0 : i32
    return %arg0, %c0_i32, %c0_i32_0 : i32, i32, i32
  }
  func.func @transform_2(%arg0: i32, %arg1: i32) -> (i32, i32, i32, i32) {
    %c2_i32 = arith.constant 2 : i32
    %0 = arith.muli %c2_i32, %arg1 : i32
    %c0_i32 = arith.constant 0 : i32
    %1 = arith.subi %c0_i32, %0 : i32
    %2 = arith.muli %arg0, %1 : i32
    %3 = arith.addi %arg1, %2 : i32
    %c0_i32_0 = arith.constant 0 : i32
    %c0_i32_1 = arith.constant 0 : i32
    %c0_i32_2 = arith.constant 0 : i32
    return %arg0, %3, %c0_i32_0, %c0_i32_1 : i32, i32, i32, i32
  }
}

module attributes {stable_mosaic.version = 11 : i64} {
  func.func @bilstm_kernel(%arg0: i32, %arg1: i32, %arg2: memref<1x4x2x128xf32, #tpu.memory_space<vmem>>, %arg3: memref<1x32x128xf32, #tpu.memory_space<vmem>>, %arg4: memref<1x4x2x32xf32, #tpu.memory_space<vmem>>, %arg5: memref<2x32xf32, #tpu.memory_space<vmem>>, %arg6: memref<2x32xf32, #tpu.memory_space<vmem>>) attributes {dimension_semantics = [#tpu.dimension_semantics<parallel>, #tpu.dimension_semantics<arbitrary>], iteration_bounds = array<i64: 2, 1>, scalar_prefetch = 0 : i64, scratch_operands = 2 : i64, tpu.core_type = #tpu.core_type<tc>, window_params = [{transform_indices = @transform_0, window_bounds = array<i64: 1, 4, 2, 128>}, {transform_indices = @transform_1, window_bounds = array<i64: 1, 32, 128>}, {transform_indices = @transform_2, window_bounds = array<i64: 1, 4, 2, 32>}]} {
    %c0_i32 = arith.constant 0 : i32
    %0 = arith.cmpi eq, %arg1, %c0_i32 : i32
    %1 = arith.extui %0 : i1 to i32
    %c0_i32_0 = arith.constant 0 : i32
    %2 = arith.cmpi ne, %1, %c0_i32_0 : i32
    scf.if %2 {
      %cst = arith.constant 0.000000e+00 : f32
      %4 = vector.broadcast %cst : f32 to vector<2x32xf32>
      %c0 = arith.constant 0 : index
      %c0_3 = arith.constant 0 : index
      %5 = vector.load %arg5[%c0, %c0_3] : memref<2x32xf32, #tpu.memory_space<vmem>>, vector<2x32xf32>
      tpu.vector_store %arg5[%c0, %c0_3], %4 {strides = array<i32>} : memref<2x32xf32, #tpu.memory_space<vmem>>, vector<2x32xf32>,
      %cst_4 = arith.constant 0.000000e+00 : f32
      %6 = vector.broadcast %cst_4 : f32 to vector<2x32xf32>
      %c0_5 = arith.constant 0 : index
      %c0_6 = arith.constant 0 : index
      %7 = vector.load %arg6[%c0_5, %c0_6] : memref<2x32xf32, #tpu.memory_space<vmem>>, vector<2x32xf32>
      tpu.vector_store %arg6[%c0_5, %c0_6], %6 {strides = array<i32>} : memref<2x32xf32, #tpu.memory_space<vmem>>, vector<2x32xf32>,
    } else {
    }
    %c0_i32_1 = arith.constant 0 : i32
    %c4_i32 = arith.constant 4 : i32
    %3 = arith.addi %c0_i32_1, %c4_i32 : i32
    %c1_i32 = arith.constant 1 : i32
    scf.for %arg7 = %c0_i32_1 to %3 step %c1_i32  : i32 {
      %c2_i32 = arith.constant 2 : i32
      %4 = arith.muli %c2_i32, %arg7 : i32
      %c3_i32 = arith.constant 3 : i32
      %5 = arith.subi %c3_i32, %4 : i32
      %6 = arith.muli %arg0, %5 : i32
      %7 = arith.addi %arg7, %6 : i32
      %c0 = arith.constant 0 : index
      %8 = arith.index_cast %7 : i32 to index
      %c0_3 = arith.constant 0 : index
      %c0_4 = arith.constant 0 : index
      %9 = vector.load %arg2[%c0, %8, %c0_3, %c0_4] : memref<1x4x2x128xf32, #tpu.memory_space<vmem>>, vector<1x1x2x128xf32>
      %10 = vector.shape_cast %9 : vector<1x1x2x128xf32> to vector<2x128xf32>
      %c0_5 = arith.constant 0 : index
      %c0_6 = arith.constant 0 : index
      %11 = vector.load %arg5[%c0_5, %c0_6] : memref<2x32xf32, #tpu.memory_space<vmem>>, vector<2x32xf32>
      %c0_7 = arith.constant 0 : index
      %c0_8 = arith.constant 0 : index
      %c0_9 = arith.constant 0 : index
      %12 = vector.load %arg3[%c0_7, %c0_8, %c0_9] : memref<1x32x128xf32, #tpu.memory_space<vmem>>, vector<1x32x128xf32>
      %13 = vector.shape_cast %12 : vector<1x32x128xf32> to vector<32x128xf32>
      %cst = arith.constant dense<0.000000e+00> : vector<2x128xf32>
      %14 = tpu.matmul %11, %13, %cst {dimension_numbers = #tpu.dot_dimension_numbers<[1], [0], [0], [1], [0, 0, 1, 1], [], []>} : vector<2x32xf32>, vector<32x128xf32>, vector<2x128xf32> -> vector<2x128xf32>
      %15 = arith.addf %10, %14 : vector<2x128xf32>
      %16 = vector.extract_strided_slice %15 {offsets = [0, 0], sizes = [2, 32], strides = [1, 1]} : vector<2x128xf32> to vector<2x32xf32>
      %17 = arith.negf %16 : vector<2x32xf32>
      %18 = math.exp %17 : vector<2x32xf32>
      %cst_10 = arith.constant 1.000000e+00 : f32
      %19 = vector.broadcast %cst_10 : f32 to vector<2x32xf32>
      %20 = arith.addf %19, %18 : vector<2x32xf32>
      %21 = arith.divf %19, %20 : vector<2x32xf32>
      %22 = vector.extract_strided_slice %15 {offsets = [0, 32], sizes = [2, 32], strides = [1, 1]} : vector<2x128xf32> to vector<2x32xf32>
      %23 = arith.negf %22 : vector<2x32xf32>
      %24 = math.exp %23 : vector<2x32xf32>
      %cst_11 = arith.constant 1.000000e+00 : f32
      %25 = vector.broadcast %cst_11 : f32 to vector<2x32xf32>
      %26 = arith.addf %25, %24 : vector<2x32xf32>
      %27 = arith.divf %25, %26 : vector<2x32xf32>
      %28 = vector.extract_strided_slice %15 {offsets = [0, 64], sizes = [2, 32], strides = [1, 1]} : vector<2x128xf32> to vector<2x32xf32>
      %29 = math.tanh %28 : vector<2x32xf32>
      %30 = vector.extract_strided_slice %15 {offsets = [0, 96], sizes = [2, 32], strides = [1, 1]} : vector<2x128xf32> to vector<2x32xf32>
      %31 = arith.negf %30 : vector<2x32xf32>
      %32 = math.exp %31 : vector<2x32xf32>
      %cst_12 = arith.constant 1.000000e+00 : f32
      %33 = vector.broadcast %cst_12 : f32 to vector<2x32xf32>
      %34 = arith.addf %33, %32 : vector<2x32xf32>
      %35 = arith.divf %33, %34 : vector<2x32xf32>
      %c0_13 = arith.constant 0 : index
      %c0_14 = arith.constant 0 : index
      %36 = vector.load %arg6[%c0_13, %c0_14] : memref<2x32xf32, #tpu.memory_space<vmem>>, vector<2x32xf32>
      %37 = arith.mulf %27, %36 : vector<2x32xf32>
      %38 = arith.mulf %21, %29 : vector<2x32xf32>
      %39 = arith.addf %37, %38 : vector<2x32xf32>
      %40 = math.tanh %39 : vector<2x32xf32>
      %41 = arith.mulf %35, %40 : vector<2x32xf32>
      %c0_15 = arith.constant 0 : index
      %c0_16 = arith.constant 0 : index
      %42 = vector.load %arg6[%c0_15, %c0_16] : memref<2x32xf32, #tpu.memory_space<vmem>>, vector<2x32xf32>
      tpu.vector_store %arg6[%c0_15, %c0_16], %39 {strides = array<i32>} : memref<2x32xf32, #tpu.memory_space<vmem>>, vector<2x32xf32>,
      %c0_17 = arith.constant 0 : index
      %c0_18 = arith.constant 0 : index
      %43 = vector.load %arg5[%c0_17, %c0_18] : memref<2x32xf32, #tpu.memory_space<vmem>>, vector<2x32xf32>
      tpu.vector_store %arg5[%c0_17, %c0_18], %41 {strides = array<i32>} : memref<2x32xf32, #tpu.memory_space<vmem>>, vector<2x32xf32>,
      %c0_19 = arith.constant 0 : index
      %44 = arith.index_cast %7 : i32 to index
      %c0_20 = arith.constant 0 : index
      %c0_21 = arith.constant 0 : index
      %45 = vector.load %arg4[%c0_19, %44, %c0_20, %c0_21] : memref<1x4x2x32xf32, #tpu.memory_space<vmem>>, vector<1x1x2x32xf32>
      %46 = vector.shape_cast %45 : vector<1x1x2x32xf32> to vector<2x32xf32>
      %47 = vector.shape_cast %41 : vector<2x32xf32> to vector<1x1x2x32xf32>
      tpu.vector_store %arg4[%c0_19, %44, %c0_20, %c0_21], %47 {strides = array<i32>} : memref<1x4x2x32xf32, #tpu.memory_space<vmem>>, vector<1x1x2x32xf32>,
    }
    %c4_i32_2 = arith.constant 4 : i32
    return
  }
  func.func @transform_0(%arg0: i32, %arg1: i32) -> (i32, i32, i32, i32) {
    %c2_i32 = arith.constant 2 : i32
    %0 = arith.muli %c2_i32, %arg1 : i32
    %c0_i32 = arith.constant 0 : i32
    %1 = arith.subi %c0_i32, %0 : i32
    %2 = arith.muli %arg0, %1 : i32
    %3 = arith.addi %arg1, %2 : i32
    %c0_i32_0 = arith.constant 0 : i32
    %c0_i32_1 = arith.constant 0 : i32
    %c0_i32_2 = arith.constant 0 : i32
    return %arg0, %3, %c0_i32_0, %c0_i32_1 : i32, i32, i32, i32
  }
  func.func @transform_1(%arg0: i32, %arg1: i32) -> (i32, i32, i32) {
    %c0_i32 = arith.constant 0 : i32
    %c0_i32_0 = arith.constant 0 : i32
    %c0_i32_1 = arith.constant 0 : i32
    return %arg0, %c0_i32, %c0_i32_0 : i32, i32, i32
  }
  func.func @transform_2(%arg0: i32, %arg1: i32) -> (i32, i32, i32, i32) {
    %c2_i32 = arith.constant 2 : i32
    %0 = arith.muli %c2_i32, %arg1 : i32
    %c0_i32 = arith.constant 0 : i32
    %1 = arith.subi %c0_i32, %0 : i32
    %2 = arith.muli %arg0, %1 : i32
    %3 = arith.addi %arg1, %2 : i32
    %c0_i32_0 = arith.constant 0 : i32
    %c0_i32_1 = arith.constant 0 : i32
    %c0_i32_2 = arith.constant 0 : i32
    return %arg0, %3, %c0_i32_0, %c0_i32_1 : i32, i32, i32, i32
  }
}

module attributes {stable_mosaic.version = 11 : i64} {
  func.func @bilstm_kernel(%arg0: i32, %arg1: i32, %arg2: memref<1x2x2x128xf32, #tpu.memory_space<vmem>>, %arg3: memref<1x32x128xf32, #tpu.memory_space<vmem>>, %arg4: memref<1x2x2x32xf32, #tpu.memory_space<vmem>>, %arg5: memref<2x32xf32, #tpu.memory_space<vmem>>, %arg6: memref<2x32xf32, #tpu.memory_space<vmem>>) attributes {dimension_semantics = [#tpu.dimension_semantics<parallel>, #tpu.dimension_semantics<arbitrary>], iteration_bounds = array<i64: 2, 1>, scalar_prefetch = 0 : i64, scratch_operands = 2 : i64, tpu.core_type = #tpu.core_type<tc>, window_params = [{transform_indices = @transform_0, window_bounds = array<i64: 1, 2, 2, 128>}, {transform_indices = @transform_1, window_bounds = array<i64: 1, 32, 128>}, {transform_indices = @transform_2, window_bounds = array<i64: 1, 2, 2, 32>}]} {
    %c0_i32 = arith.constant 0 : i32
    %0 = arith.cmpi eq, %arg1, %c0_i32 : i32
    %1 = arith.extui %0 : i1 to i32
    %c0_i32_0 = arith.constant 0 : i32
    %2 = arith.cmpi ne, %1, %c0_i32_0 : i32
    scf.if %2 {
      %cst = arith.constant 0.000000e+00 : f32
      %4 = vector.broadcast %cst : f32 to vector<2x32xf32>
      %c0 = arith.constant 0 : index
      %c0_3 = arith.constant 0 : index
      %5 = vector.load %arg5[%c0, %c0_3] : memref<2x32xf32, #tpu.memory_space<vmem>>, vector<2x32xf32>
      tpu.vector_store %arg5[%c0, %c0_3], %4 {strides = array<i32>} : memref<2x32xf32, #tpu.memory_space<vmem>>, vector<2x32xf32>,
      %cst_4 = arith.constant 0.000000e+00 : f32
      %6 = vector.broadcast %cst_4 : f32 to vector<2x32xf32>
      %c0_5 = arith.constant 0 : index
      %c0_6 = arith.constant 0 : index
      %7 = vector.load %arg6[%c0_5, %c0_6] : memref<2x32xf32, #tpu.memory_space<vmem>>, vector<2x32xf32>
      tpu.vector_store %arg6[%c0_5, %c0_6], %6 {strides = array<i32>} : memref<2x32xf32, #tpu.memory_space<vmem>>, vector<2x32xf32>,
    } else {
    }
    %c0_i32_1 = arith.constant 0 : i32
    %c2_i32 = arith.constant 2 : i32
    %3 = arith.addi %c0_i32_1, %c2_i32 : i32
    %c1_i32 = arith.constant 1 : i32
    scf.for %arg7 = %c0_i32_1 to %3 step %c1_i32  : i32 {
      %c2_i32_3 = arith.constant 2 : i32
      %4 = arith.muli %c2_i32_3, %arg7 : i32
      %c1_i32_4 = arith.constant 1 : i32
      %5 = arith.subi %c1_i32_4, %4 : i32
      %6 = arith.muli %arg0, %5 : i32
      %7 = arith.addi %arg7, %6 : i32
      %c0 = arith.constant 0 : index
      %8 = arith.index_cast %7 : i32 to index
      %c0_5 = arith.constant 0 : index
      %c0_6 = arith.constant 0 : index
      %9 = vector.load %arg2[%c0, %8, %c0_5, %c0_6] : memref<1x2x2x128xf32, #tpu.memory_space<vmem>>, vector<1x1x2x128xf32>
      %10 = vector.shape_cast %9 : vector<1x1x2x128xf32> to vector<2x128xf32>
      %c0_7 = arith.constant 0 : index
      %c0_8 = arith.constant 0 : index
      %11 = vector.load %arg5[%c0_7, %c0_8] : memref<2x32xf32, #tpu.memory_space<vmem>>, vector<2x32xf32>
      %c0_9 = arith.constant 0 : index
      %c0_10 = arith.constant 0 : index
      %c0_11 = arith.constant 0 : index
      %12 = vector.load %arg3[%c0_9, %c0_10, %c0_11] : memref<1x32x128xf32, #tpu.memory_space<vmem>>, vector<1x32x128xf32>
      %13 = vector.shape_cast %12 : vector<1x32x128xf32> to vector<32x128xf32>
      %cst = arith.constant dense<0.000000e+00> : vector<2x128xf32>
      %14 = tpu.matmul %11, %13, %cst {dimension_numbers = #tpu.dot_dimension_numbers<[1], [0], [0], [1], [0, 0, 1, 1], [], []>} : vector<2x32xf32>, vector<32x128xf32>, vector<2x128xf32> -> vector<2x128xf32>
      %15 = arith.addf %10, %14 : vector<2x128xf32>
      %16 = vector.extract_strided_slice %15 {offsets = [0, 0], sizes = [2, 32], strides = [1, 1]} : vector<2x128xf32> to vector<2x32xf32>
      %17 = arith.negf %16 : vector<2x32xf32>
      %18 = math.exp %17 : vector<2x32xf32>
      %cst_12 = arith.constant 1.000000e+00 : f32
      %19 = vector.broadcast %cst_12 : f32 to vector<2x32xf32>
      %20 = arith.addf %19, %18 : vector<2x32xf32>
      %21 = arith.divf %19, %20 : vector<2x32xf32>
      %22 = vector.extract_strided_slice %15 {offsets = [0, 32], sizes = [2, 32], strides = [1, 1]} : vector<2x128xf32> to vector<2x32xf32>
      %23 = arith.negf %22 : vector<2x32xf32>
      %24 = math.exp %23 : vector<2x32xf32>
      %cst_13 = arith.constant 1.000000e+00 : f32
      %25 = vector.broadcast %cst_13 : f32 to vector<2x32xf32>
      %26 = arith.addf %25, %24 : vector<2x32xf32>
      %27 = arith.divf %25, %26 : vector<2x32xf32>
      %28 = vector.extract_strided_slice %15 {offsets = [0, 64], sizes = [2, 32], strides = [1, 1]} : vector<2x128xf32> to vector<2x32xf32>
      %29 = math.tanh %28 : vector<2x32xf32>
      %30 = vector.extract_strided_slice %15 {offsets = [0, 96], sizes = [2, 32], strides = [1, 1]} : vector<2x128xf32> to vector<2x32xf32>
      %31 = arith.negf %30 : vector<2x32xf32>
      %32 = math.exp %31 : vector<2x32xf32>
      %cst_14 = arith.constant 1.000000e+00 : f32
      %33 = vector.broadcast %cst_14 : f32 to vector<2x32xf32>
      %34 = arith.addf %33, %32 : vector<2x32xf32>
      %35 = arith.divf %33, %34 : vector<2x32xf32>
      %c0_15 = arith.constant 0 : index
      %c0_16 = arith.constant 0 : index
      %36 = vector.load %arg6[%c0_15, %c0_16] : memref<2x32xf32, #tpu.memory_space<vmem>>, vector<2x32xf32>
      %37 = arith.mulf %27, %36 : vector<2x32xf32>
      %38 = arith.mulf %21, %29 : vector<2x32xf32>
      %39 = arith.addf %37, %38 : vector<2x32xf32>
      %40 = math.tanh %39 : vector<2x32xf32>
      %41 = arith.mulf %35, %40 : vector<2x32xf32>
      %c0_17 = arith.constant 0 : index
      %c0_18 = arith.constant 0 : index
      %42 = vector.load %arg6[%c0_17, %c0_18] : memref<2x32xf32, #tpu.memory_space<vmem>>, vector<2x32xf32>
      tpu.vector_store %arg6[%c0_17, %c0_18], %39 {strides = array<i32>} : memref<2x32xf32, #tpu.memory_space<vmem>>, vector<2x32xf32>,
      %c0_19 = arith.constant 0 : index
      %c0_20 = arith.constant 0 : index
      %43 = vector.load %arg5[%c0_19, %c0_20] : memref<2x32xf32, #tpu.memory_space<vmem>>, vector<2x32xf32>
      tpu.vector_store %arg5[%c0_19, %c0_20], %41 {strides = array<i32>} : memref<2x32xf32, #tpu.memory_space<vmem>>, vector<2x32xf32>,
      %c0_21 = arith.constant 0 : index
      %44 = arith.index_cast %7 : i32 to index
      %c0_22 = arith.constant 0 : index
      %c0_23 = arith.constant 0 : index
      %45 = vector.load %arg4[%c0_21, %44, %c0_22, %c0_23] : memref<1x2x2x32xf32, #tpu.memory_space<vmem>>, vector<1x1x2x32xf32>
      %46 = vector.shape_cast %45 : vector<1x1x2x32xf32> to vector<2x32xf32>
      %47 = vector.shape_cast %41 : vector<2x32xf32> to vector<1x1x2x32xf32>
      tpu.vector_store %arg4[%c0_21, %44, %c0_22, %c0_23], %47 {strides = array<i32>} : memref<1x2x2x32xf32, #tpu.memory_space<vmem>>, vector<1x1x2x32xf32>,
    }
    %c2_i32_2 = arith.constant 2 : i32
    return
  }
  func.func @transform_0(%arg0: i32, %arg1: i32) -> (i32, i32, i32, i32) {
    %c2_i32 = arith.constant 2 : i32
    %0 = arith.muli %c2_i32, %arg1 : i32
    %c0_i32 = arith.constant 0 : i32
    %1 = arith.subi %c0_i32, %0 : i32
    %2 = arith.muli %arg0, %1 : i32
    %3 = arith.addi %arg1, %2 : i32
    %c0_i32_0 = arith.constant 0 : i32
    %c0_i32_1 = arith.constant 0 : i32
    %c0_i32_2 = arith.constant 0 : i32
    return %arg0, %3, %c0_i32_0, %c0_i32_1 : i32, i32, i32, i32
  }
  func.func @transform_1(%arg0: i32, %arg1: i32) -> (i32, i32, i32) {
    %c0_i32 = arith.constant 0 : i32
    %c0_i32_0 = arith.constant 0 : i32
    %c0_i32_1 = arith.constant 0 : i32
    return %arg0, %c0_i32, %c0_i32_0 : i32, i32, i32
  }
  func.func @transform_2(%arg0: i32, %arg1: i32) -> (i32, i32, i32, i32) {
    %c2_i32 = arith.constant 2 : i32
    %0 = arith.muli %c2_i32, %arg1 : i32
    %c0_i32 = arith.constant 0 : i32
    %1 = arith.subi %c0_i32, %0 : i32
    %2 = arith.muli %arg0, %1 : i32
    %3 = arith.addi %arg1, %2 : i32
    %c0_i32_0 = arith.constant 0 : i32
    %c0_i32_1 = arith.constant 0 : i32
    %c0_i32_2 = arith.constant 0 : i32
    return %arg0, %3, %c0_i32_0, %c0_i32_1 : i32, i32, i32, i32
  }
}

</mosaic_0001>

<bundles_post_ra>
// kernel: listen_forward.3
= control target key start
LH: loop header
LB: loop body
LE: loop exit
PB: predicated region body
PF: predicated region fallthrough
CT: control target
= control target key end

     0   :  { %s658_s9 = smov 0   ;;  %s660_s10 = smov 0   ;;  %s733_s0 = inlined_call_operand.vmem [shape: f32[2,8,2,128], index: 0, kind: input, shape index: {}]   ;;  %s734_s1 = inlined_call_operand.vmem [shape: f32[2,32,128], index: 1, kind: input, shape index: {}]   ;;  %s735_s2 = inlined_call_operand.vmem [shape: f32[2,8,2,32], index: 2, kind: output, shape index: {}]  }
   0x1   :  { %s662_s11 = smov 0  }
   0x2 LB: > { %s24_s12 = sadd.s32 1, %s626_s10  ;;  %p519_p0 = scmp.ge.s32.totalorder %s630_s11, 1  ;;  %s630_s11 = sphi %s662_s11, %s12_s11   ;;  %s626_s10 = sphi %s660_s10, %s737_s10   ;;  %s622_s9 = sphi %s658_s9, %s736_s9  }
   0x3   : > { %p26_p1 = scmp.ge.s32.totalorder %s24_s12, 2  ;;  %p167_p2 = scmp.lt.s32.totalorder %s630_s11, 3 }
   0x5   : > { %s739_s12 = smov (%p26_p1, %s24_s12), 0  ;;  %p168_p3 = pnand %p519_p0, %p167_p2 }
   0x6   : > { %p215_p4 = scmp.lt.s32.totalorder (!%p168_p3), %s622_s9, 1  ;;  %vm255_vm0 = vcmask (!%p168_p3), 254976   ;;  %v636_v0 = vmov (!%p168_p3), 0.0   ;;  %s697_s25 = smov (!%p168_p3), 0  }
   0x7   : > { %171 = sbr.rel (%p168_p3) target bundleno = 732 (0x2dc), region = 28  ;;  %256 = vst.msk [vmem:[#allocation2] sm:$0x3] (!%p168_p3), %vm255_vm0, %v636_v0  ;;  %257 = vst.msk [vmem:[#allocation3] sm:$0x3] (!%p168_p3), %vm255_vm0, %v636_v0 }
   0xe   : > { %s216_s13 = scalar_select %p215_p4, %s622_s9, 1 }
  0x10   : > { %s532_s14 = sshll.u32 %s216_s13, 4  ;;  %s533_s15 = sshll.u32 %s216_s13, 5 }
  0x11   : > { %s685_s18 = scalar_lea.vmem %s733_s0, %s532_s14  ;;  %s690_s21 = scalar_lea.vmem %s734_s1, %s533_s15 }
  0x12   : > { %s695_s24 = scalar_lea.vmem %s735_s2, %s532_s14 }
  0x13 LB: >> { %v272_v1 = vld [vmem:[%s690_s21] sm:$0xff]  ;;  %v273_v2 = vld [vmem:[%s690_s21 + $0x8] sm:$0xff]  ;;  %v274_v3 = vld [vmem:[%s690_s21 + $0x10] sm:$0xff]  ;;  %v637_v4 = vmov 0.0|0.0   ;;  %vm638_vm1 = vmmov 0   ;;  %v639_v7 = vmov 0.0   ;;  %s634_s25 = sphi %s697_s25, %s263_s25  }
  0x14   : >> { %551 = vmatprep.subr.bf16.mxu0 %v637_v4  ;;  %v552_v5 = vpack.c.bf16 %v273_v2, %v272_v1  ;;  %v275_v6 = vld [vmem:[%s690_s21 + $0x18] sm:$0xff]  ;;  %548 = vmatprep.mubr.msk.f32.mxu0 %vm638_vm1, %v639_v7  ;;  %v271_v9 = vld [vmem:[#allocation2] sm:$0x3]  ;;  %vm276_vm2 = vcmask 261120   ;;  %s526_s26 = sshll.u32 %s634_s25, 1  ;;  %s640_s4 = smov 64  }
  0x15   : >> { %v555_v8 = vpack.c.bf16 %v275_v6, %v274_v3  ;;  %s265_s27 = ssub.s32 7, %s526_s26  ;;  %v358_v15 = vld [vmem:[#allocation3] sm:$0x3]  ;;  %s641_s5 = smov 32  }
  0x16   : >> { %553 = vmatpush3.bf16.msra.mxu0 %v552_v5  ;;  %s266_s28 = smul.u32 %s622_s9, %s265_s27  ;;  %s642_s6 = smov 96  }
  0x17   : >> { %554 = vmatprep.subr.bf16.mxu0 %v637_v4 }
  0x18   : >> { %s709_s29 = sadd.s32 %s634_s25, %s266_s28  ;;  %s263_s25 = sadd.s32 1, %s634_s25  }
  0x19   : >> { %s527_s30 = sshll.u32 %s709_s29, 1  ;;  %p260_p5 = scmp.ge.s32.totalorder %s263_s25, 8  }
  0x1a   : >> { %556 = vmatpush3.bf16.msra.mxu0 %v555_v8  ;;  %s269_s3 = scalar_lea.vmem %s685_s18, %s527_s30  ;;  %s391_s7 = scalar_lea.vmem %s695_s24, %s527_s30 }
  0x1b   : >> { %v270_v10 = vld [vmem:[%s269_s3] sm:$0x3] }
  0x1d   : >> { %549 = vmatmul.mubr.msk.f32.vlgmr.msra.gmra.mrb[0].mxu0 %vm276_vm2, %v271_v9 }
  0xf0   : >> { %v346_v11 = vpop.f32.mrb[0].mxu0 }
  0xf1   : >> { %v350_v12 = vadd.f32 %v346_v11, %v270_v10  ;;  %v550_v13 = vpop.f32.mrb[1].mxu0 }
  0xf3   : >> { %596 = vtanh.f32 %v350_v12  ;;  %v529_v16 = vmul.f32 -1.442695, %v350_v12 }
  0xf5   : >> { %598 = vpow2.f32 %v529_v16 }
  0xfd   : >> { %v597_v14 = vpop.eup %596 }
  0xfe   : >> { %365 = vrot.lane.b32.xlu0 %v597_v14, %s640_s4 }
  0xff   : >> { %v599_v17 = vpop.eup %598 }
 0x100   : >> { %v354_v18 = vadd.f32 1.0, %v599_v17 }
 0x102   : >> { %360 = vrot.lane.b32.xlu0 %v358_v15, %s641_s5  ;;  %600 = vrcp.f32 %v354_v18 }
 0x10c   : >> { %v601_v19 = vpop.eup %600 }
 0x170   : >> { %v366_v20 = vpop.permute.xlu0 %365 }
 0x171   : >> { %v368_v21 = vmul.f32 %v601_v19, %v366_v20 }
 0x173   : >> { %370 = vrot.lane.b32.xlu1 %v368_v21, %s641_s5 }
 0x174   : >> { %v361_v22 = vpop.permute.xlu0 %360 }
 0x175   : >> { %v363_v23 = vmul.f32 %v601_v19, %v361_v22 }
 0x1e5   : >> { %v371_v24 = vpop.permute.xlu1 %370 }
 0x1e6   : >> { %v373_v25 = vadd.f32 %v371_v24, %v363_v23 }
 0x1e8   : >> { %602 = vtanh.f32 %v373_v25  ;;  %381 = vrot.lane.b32.xlu0 %v373_v25, %s642_s6 }
 0x1f2   : >> { %v603_v26 = vpop.eup %602 }
 0x1f3   : >> { %376 = vrot.lane.b32.xlu1 %v603_v26, %s640_s4 }
 0x25a   : >> { %v382_v27 = vpop.permute.xlu0 %381 }
 0x25b   : >> { %385 = vst.msk [vmem:[#allocation3] sm:$0x3] %vm255_vm0, %v382_v27 }
 0x265   : >> { %v377_v28 = vpop.permute.xlu1 %376 }
 0x266   : >> { %v379_v29 = vmul.f32 %v601_v19, %v377_v28 }
 0x268   : >> { %387 = vrot.lane.b32.xlu1 %v379_v29, %s641_s5 }
 0x2d5   : > { %262 = sbr.rel (!%p260_p5) target bundleno = 19 (0x13), region = 74 }
 0x2da   : >> { %v388_v30 = vpop.permute.xlu1 %387 }
 0x2db   : >> { %390 = vst.msk [vmem:[#allocation2] sm:$0x3] %vm255_vm0, %v388_v30  ;;  %392 = vst.msk [vmem:[%s391_s7] sm:$0x3] %vm255_vm0, %v388_v30 }
 0x2dc PF: > { %s12_s11 = sadd.s32 1, %s630_s11   ;;  %s736_s9 = smov %s626_s10 }
 0x2dd   : > { %p9_p6 = scmp.ge.s32.totalorder %s12_s11, 4   ;;  %s737_s10 = smov %s739_s12 }
 0x2df   :  { %11 = sbr.rel (!%p9_p6) target bundleno = 2 (0x2), region = 85 }

// kernel: listen_forward.4
= control target key start
LH: loop header
LB: loop body
LE: loop exit
PB: predicated region body
PF: predicated region fallthrough
CT: control target
= control target key end

     0   :  { %s658_s9 = smov 0   ;;  %s660_s10 = smov 0   ;;  %s733_s0 = inlined_call_operand.vmem [shape: f32[2,4,2,128], index: 0, kind: input, shape index: {}]   ;;  %s734_s1 = inlined_call_operand.vmem [shape: f32[2,32,128], index: 1, kind: input, shape index: {}]   ;;  %s735_s2 = inlined_call_operand.vmem [shape: f32[2,4,2,32], index: 2, kind: output, shape index: {}]  }
   0x1   :  { %s662_s11 = smov 0  }
   0x2 LB: > { %s24_s12 = sadd.s32 1, %s626_s10  ;;  %p519_p0 = scmp.ge.s32.totalorder %s630_s11, 1  ;;  %s630_s11 = sphi %s662_s11, %s12_s11   ;;  %s626_s10 = sphi %s660_s10, %s737_s10   ;;  %s622_s9 = sphi %s658_s9, %s736_s9  }
   0x3   : > { %p26_p1 = scmp.ge.s32.totalorder %s24_s12, 2  ;;  %p167_p2 = scmp.lt.s32.totalorder %s630_s11, 3 }
   0x5   : > { %s739_s12 = smov (%p26_p1, %s24_s12), 0  ;;  %p168_p3 = pnand %p519_p0, %p167_p2 }
   0x6   : > { %p215_p4 = scmp.lt.s32.totalorder (!%p168_p3), %s622_s9, 1  ;;  %vm255_vm0 = vcmask (!%p168_p3), 254976   ;;  %v636_v0 = vmov (!%p168_p3), 0.0   ;;  %s697_s25 = smov (!%p168_p3), 0  }
   0x7   : > { %171 = sbr.rel (%p168_p3) target bundleno = 732 (0x2dc), region = 28  ;;  %256 = vst.msk [vmem:[#allocation2] sm:$0x3] (!%p168_p3), %vm255_vm0, %v636_v0  ;;  %257 = vst.msk [vmem:[#allocation3] sm:$0x3] (!%p168_p3), %vm255_vm0, %v636_v0 }
   0xe   : > { %s216_s13 = scalar_select %p215_p4, %s622_s9, 1 }
  0x10   : > { %s532_s14 = sshll.u32 %s216_s13, 3  ;;  %s533_s15 = sshll.u32 %s216_s13, 5 }
  0x11   : > { %s685_s18 = scalar_lea.vmem %s733_s0, %s532_s14  ;;  %s690_s21 = scalar_lea.vmem %s734_s1, %s533_s15 }
  0x12   : > { %s695_s24 = scalar_lea.vmem %s735_s2, %s532_s14 }
  0x13 LB: >> { %v272_v1 = vld [vmem:[%s690_s21] sm:$0xff]  ;;  %v273_v2 = vld [vmem:[%s690_s21 + $0x8] sm:$0xff]  ;;  %v274_v3 = vld [vmem:[%s690_s21 + $0x10] sm:$0xff]  ;;  %v637_v4 = vmov 0.0|0.0   ;;  %vm638_vm1 = vmmov 0   ;;  %v639_v7 = vmov 0.0   ;;  %s634_s25 = sphi %s697_s25, %s263_s25  }
  0x14   : >> { %551 = vmatprep.subr.bf16.mxu0 %v637_v4  ;;  %v552_v5 = vpack.c.bf16 %v273_v2, %v272_v1  ;;  %v275_v6 = vld [vmem:[%s690_s21 + $0x18] sm:$0xff]  ;;  %548 = vmatprep.mubr.msk.f32.mxu0 %vm638_vm1, %v639_v7  ;;  %v271_v9 = vld [vmem:[#allocation2] sm:$0x3]  ;;  %vm276_vm2 = vcmask 261120   ;;  %s526_s26 = sshll.u32 %s634_s25, 1  ;;  %s640_s4 = smov 64  }
  0x15   : >> { %v555_v8 = vpack.c.bf16 %v275_v6, %v274_v3  ;;  %s265_s27 = ssub.s32 3, %s526_s26  ;;  %v358_v15 = vld [vmem:[#allocation3] sm:$0x3]  ;;  %s641_s5 = smov 32  }
  0x16   : >> { %553 = vmatpush3.bf16.msra.mxu0 %v552_v5  ;;  %s266_s28 = smul.u32 %s622_s9, %s265_s27  ;;  %s642_s6 = smov 96  }
  0x17   : >> { %554 = vmatprep.subr.bf16.mxu0 %v637_v4 }
  0x18   : >> { %s709_s29 = sadd.s32 %s634_s25, %s266_s28  ;;  %s263_s25 = sadd.s32 1, %s634_s25  }
  0x19   : >> { %s527_s30 = sshll.u32 %s709_s29, 1  ;;  %p260_p5 = scmp.ge.s32.totalorder %s263_s25, 4  }
  0x1a   : >> { %556 = vmatpush3.bf16.msra.mxu0 %v555_v8  ;;  %s269_s3 = scalar_lea.vmem %s685_s18, %s527_s30  ;;  %s391_s7 = scalar_lea.vmem %s695_s24, %s527_s30 }
  0x1b   : >> { %v270_v10 = vld [vmem:[%s269_s3] sm:$0x3] }
  0x1d   : >> { %549 = vmatmul.mubr.msk.f32.vlgmr.msra.gmra.mrb[0].mxu0 %vm276_vm2, %v271_v9 }
  0xf0   : >> { %v346_v11 = vpop.f32.mrb[0].mxu0 }
  0xf1   : >> { %v350_v12 = vadd.f32 %v346_v11, %v270_v10  ;;  %v550_v13 = vpop.f32.mrb[1].mxu0 }
  0xf3   : >> { %596 = vtanh.f32 %v350_v12  ;;  %v529_v16 = vmul.f32 -1.442695, %v350_v12 }
  0xf5   : >> { %598 = vpow2.f32 %v529_v16 }
  0xfd   : >> { %v597_v14 = vpop.eup %596 }
  0xfe   : >> { %365 = vrot.lane.b32.xlu0 %v597_v14, %s640_s4 }
  0xff   : >> { %v599_v17 = vpop.eup %598 }
 0x100   : >> { %v354_v18 = vadd.f32 1.0, %v599_v17 }
 0x102   : >> { %360 = vrot.lane.b32.xlu0 %v358_v15, %s641_s5  ;;  %600 = vrcp.f32 %v354_v18 }
 0x10c   : >> { %v601_v19 = vpop.eup %600 }
 0x170   : >> { %v366_v20 = vpop.permute.xlu0 %365 }
 0x171   : >> { %v368_v21 = vmul.f32 %v601_v19, %v366_v20 }
 0x173   : >> { %370 = vrot.lane.b32.xlu1 %v368_v21, %s641_s5 }
 0x174   : >> { %v361_v22 = vpop.permute.xlu0 %360 }
 0x175   : >> { %v363_v23 = vmul.f32 %v601_v19, %v361_v22 }
 0x1e5   : >> { %v371_v24 = vpop.permute.xlu1 %370 }
 0x1e6   : >> { %v373_v25 = vadd.f32 %v371_v24, %v363_v23 }
 0x1e8   : >> { %602 = vtanh.f32 %v373_v25  ;;  %381 = vrot.lane.b32.xlu0 %v373_v25, %s642_s6 }
 0x1f2   : >> { %v603_v26 = vpop.eup %602 }
 0x1f3   : >> { %376 = vrot.lane.b32.xlu1 %v603_v26, %s640_s4 }
 0x25a   : >> { %v382_v27 = vpop.permute.xlu0 %381 }
 0x25b   : >> { %385 = vst.msk [vmem:[#allocation3] sm:$0x3] %vm255_vm0, %v382_v27 }
 0x265   : >> { %v377_v28 = vpop.permute.xlu1 %376 }
 0x266   : >> { %v379_v29 = vmul.f32 %v601_v19, %v377_v28 }
 0x268   : >> { %387 = vrot.lane.b32.xlu1 %v379_v29, %s641_s5 }
 0x2d5   : > { %262 = sbr.rel (!%p260_p5) target bundleno = 19 (0x13), region = 74 }
 0x2da   : >> { %v388_v30 = vpop.permute.xlu1 %387 }
 0x2db   : >> { %390 = vst.msk [vmem:[#allocation2] sm:$0x3] %vm255_vm0, %v388_v30  ;;  %392 = vst.msk [vmem:[%s391_s7] sm:$0x3] %vm255_vm0, %v388_v30 }
 0x2dc PF: > { %s12_s11 = sadd.s32 1, %s630_s11   ;;  %s736_s9 = smov %s626_s10 }
 0x2dd   : > { %p9_p6 = scmp.ge.s32.totalorder %s12_s11, 4   ;;  %s737_s10 = smov %s739_s12 }
 0x2df   :  { %11 = sbr.rel (!%p9_p6) target bundleno = 2 (0x2), region = 85 }

// kernel: listen_forward.5
= control target key start
LH: loop header
LB: loop body
LE: loop exit
PB: predicated region body
PF: predicated region fallthrough
CT: control target
= control target key end

     0   :  { %s658_s9 = smov 0   ;;  %s660_s10 = smov 0   ;;  %s733_s0 = inlined_call_operand.vmem [shape: f32[2,2,2,128], index: 0, kind: input, shape index: {}]   ;;  %s734_s1 = inlined_call_operand.vmem [shape: f32[2,32,128], index: 1, kind: input, shape index: {}]   ;;  %s735_s2 = inlined_call_operand.vmem [shape: f32[2,2,2,32], index: 2, kind: output, shape index: {}]  }
   0x1   :  { %s662_s11 = smov 0  }
   0x2 LB: > { %s24_s12 = sadd.s32 1, %s626_s10  ;;  %p519_p0 = scmp.ge.s32.totalorder %s630_s11, 1  ;;  %s630_s11 = sphi %s662_s11, %s12_s11   ;;  %s626_s10 = sphi %s660_s10, %s737_s10   ;;  %s622_s9 = sphi %s658_s9, %s736_s9  }
   0x3   : > { %p26_p1 = scmp.ge.s32.totalorder %s24_s12, 2  ;;  %p167_p2 = scmp.lt.s32.totalorder %s630_s11, 3 }
   0x5   : > { %s739_s12 = smov (%p26_p1, %s24_s12), 0  ;;  %p168_p3 = pnand %p519_p0, %p167_p2 }
   0x6   : > { %p215_p4 = scmp.lt.s32.totalorder (!%p168_p3), %s622_s9, 1  ;;  %vm255_vm0 = vcmask (!%p168_p3), 254976   ;;  %v636_v0 = vmov (!%p168_p3), 0.0   ;;  %s697_s25 = smov (!%p168_p3), 0  }
   0x7   : > { %171 = sbr.rel (%p168_p3) target bundleno = 732 (0x2dc), region = 28  ;;  %256 = vst.msk [vmem:[#allocation2] sm:$0x3] (!%p168_p3), %vm255_vm0, %v636_v0  ;;  %257 = vst.msk [vmem:[#allocation3] sm:$0x3] (!%p168_p3), %vm255_vm0, %v636_v0 }
   0xe   : > { %s216_s13 = scalar_select %p215_p4, %s622_s9, 1 }
  0x10   : > { %s532_s14 = sshll.u32 %s216_s13, 2  ;;  %s533_s15 = sshll.u32 %s216_s13, 5 }
  0x11   : > { %s685_s18 = scalar_lea.vmem %s733_s0, %s532_s14  ;;  %s690_s21 = scalar_lea.vmem %s734_s1, %s533_s15 }
  0x12   : > { %s695_s24 = scalar_lea.vmem %s735_s2, %s532_s14 }
  0x13 LB: >> { %v272_v1 = vld [vmem:[%s690_s21] sm:$0xff]  ;;  %v273_v2 = vld [vmem:[%s690_s21 + $0x8] sm:$0xff]  ;;  %v274_v3 = vld [vmem:[%s690_s21 + $0x10] sm:$0xff]  ;;  %v637_v4 = vmov 0.0|0.0   ;;  %vm638_vm1 = vmmov 0   ;;  %v639_v7 = vmov 0.0   ;;  %s634_s25 = sphi %s697_s25, %s263_s25  }
  0x14   : >> { %551 = vmatprep.subr.bf16.mxu0 %v637_v4  ;;  %v552_v5 = vpack.c.bf16 %v273_v2, %v272_v1  ;;  %v275_v6 = vld [vmem:[%s690_s21 + $0x18] sm:$0xff]  ;;  %548 = vmatprep.mubr.msk.f32.mxu0 %vm638_vm1, %v639_v7  ;;  %v271_v9 = vld [vmem:[#allocation2] sm:$0x3]  ;;  %vm276_vm2 = vcmask 261120   ;;  %s526_s26 = sshll.u32 %s634_s25, 1  ;;  %s640_s4 = smov 64  }
  0x15   : >> { %v555_v8 = vpack.c.bf16 %v275_v6, %v274_v3  ;;  %s265_s27 = ssub.s32 1, %s526_s26  ;;  %v358_v15 = vld [vmem:[#allocation3] sm:$0x3]  ;;  %s641_s5 = smov 32  }
  0x16   : >> { %553 = vmatpush3.bf16.msra.mxu0 %v552_v5  ;;  %s266_s28 = smul.u32 %s622_s9, %s265_s27  ;;  %s642_s6 = smov 96  }
  0x17   : >> { %554 = vmatprep.subr.bf16.mxu0 %v637_v4 }
  0x18   : >> { %s709_s29 = sadd.s32 %s634_s25, %s266_s28  ;;  %s263_s25 = sadd.s32 1, %s634_s25  }
  0x19   : >> { %s527_s30 = sshll.u32 %s709_s29, 1  ;;  %p260_p5 = scmp.ge.s32.totalorder %s263_s25, 2  }
  0x1a   : >> { %556 = vmatpush3.bf16.msra.mxu0 %v555_v8  ;;  %s269_s3 = scalar_lea.vmem %s685_s18, %s527_s30  ;;  %s391_s7 = scalar_lea.vmem %s695_s24, %s527_s30 }
  0x1b   : >> { %v270_v10 = vld [vmem:[%s269_s3] sm:$0x3] }
  0x1d   : >> { %549 = vmatmul.mubr.msk.f32.vlgmr.msra.gmra.mrb[0].mxu0 %vm276_vm2, %v271_v9 }
  0xf0   : >> { %v346_v11 = vpop.f32.mrb[0].mxu0 }
  0xf1   : >> { %v350_v12 = vadd.f32 %v346_v11, %v270_v10  ;;  %v550_v13 = vpop.f32.mrb[1].mxu0 }
  0xf3   : >> { %596 = vtanh.f32 %v350_v12  ;;  %v529_v16 = vmul.f32 -1.442695, %v350_v12 }
  0xf5   : >> { %598 = vpow2.f32 %v529_v16 }
  0xfd   : >> { %v597_v14 = vpop.eup %596 }
  0xfe   : >> { %365 = vrot.lane.b32.xlu0 %v597_v14, %s640_s4 }
  0xff   : >> { %v599_v17 = vpop.eup %598 }
 0x100   : >> { %v354_v18 = vadd.f32 1.0, %v599_v17 }
 0x102   : >> { %360 = vrot.lane.b32.xlu0 %v358_v15, %s641_s5  ;;  %600 = vrcp.f32 %v354_v18 }
 0x10c   : >> { %v601_v19 = vpop.eup %600 }
 0x170   : >> { %v366_v20 = vpop.permute.xlu0 %365 }
 0x171   : >> { %v368_v21 = vmul.f32 %v601_v19, %v366_v20 }
 0x173   : >> { %370 = vrot.lane.b32.xlu1 %v368_v21, %s641_s5 }
 0x174   : >> { %v361_v22 = vpop.permute.xlu0 %360 }
 0x175   : >> { %v363_v23 = vmul.f32 %v601_v19, %v361_v22 }
 0x1e5   : >> { %v371_v24 = vpop.permute.xlu1 %370 }
 0x1e6   : >> { %v373_v25 = vadd.f32 %v371_v24, %v363_v23 }
 0x1e8   : >> { %602 = vtanh.f32 %v373_v25  ;;  %381 = vrot.lane.b32.xlu0 %v373_v25, %s642_s6 }
 0x1f2   : >> { %v603_v26 = vpop.eup %602 }
 0x1f3   : >> { %376 = vrot.lane.b32.xlu1 %v603_v26, %s640_s4 }
 0x25a   : >> { %v382_v27 = vpop.permute.xlu0 %381 }
 0x25b   : >> { %385 = vst.msk [vmem:[#allocation3] sm:$0x3] %vm255_vm0, %v382_v27 }
 0x265   : >> { %v377_v28 = vpop.permute.xlu1 %376 }
 0x266   : >> { %v379_v29 = vmul.f32 %v601_v19, %v377_v28 }
 0x268   : >> { %387 = vrot.lane.b32.xlu1 %v379_v29, %s641_s5 }
 0x2d5   : > { %262 = sbr.rel (!%p260_p5) target bundleno = 19 (0x13), region = 74 }
 0x2da   : >> { %v388_v30 = vpop.permute.xlu1 %387 }
 0x2db   : >> { %390 = vst.msk [vmem:[#allocation2] sm:$0x3] %vm255_vm0, %v388_v30  ;;  %392 = vst.msk [vmem:[%s391_s7] sm:$0x3] %vm255_vm0, %v388_v30 }
 0x2dc PF: > { %s12_s11 = sadd.s32 1, %s630_s11   ;;  %s736_s9 = smov %s626_s10 }
 0x2dd   : > { %p9_p6 = scmp.ge.s32.totalorder %s12_s11, 4   ;;  %s737_s10 = smov %s739_s12 }
 0x2df   :  { %11 = sbr.rel (!%p9_p6) target bundleno = 2 (0x2), region = 85 }

</bundles_post_ra>
